<compile_context>
chip_gen: v6e
topology: v6e:2x2x1
jax: 0.10.0
libtpu: 0.0.40
codegen_flags: <defaults>
</compile_context>

<pallas_src>
import math

import jax
import jax.numpy as jnp
from jax.experimental import pallas as pl
from jax.experimental.pallas import tpu as pltpu


# ----------------------------------------------------------------------------
# Buffer construction (matches nn.Module.__init__ exactly)
# ----------------------------------------------------------------------------
def build_rope_buffers(dim, pt_seq_len, ft_seq_len=None, freqs_for="lang",
                       theta=10000.0, max_freq=10.0, num_freqs=1):
    if ft_seq_len is None:
        ft_seq_len = pt_seq_len

    if freqs_for == "lang":
        freqs = 1.0 / (theta ** (jnp.arange(0, dim, 2)[: dim // 2]
                                 .astype(jnp.float32) / dim))
    elif freqs_for == "pixel":
        freqs = jnp.linspace(1.0, max_freq / 2.0, dim // 2,
                             dtype=jnp.float32) * math.pi
    elif freqs_for == "constant":
        freqs = jnp.ones((num_freqs,), jnp.float32)
    else:
        raise ValueError(f"unknown modality {freqs_for}")

    t = jnp.arange(ft_seq_len, dtype=jnp.float32) / ft_seq_len * pt_seq_len
    freqs = t[:, None] * freqs[None, :]                 # (ft, dim//2)
    freqs = jnp.repeat(freqs, 2, axis=-1)               # '... n -> ... (n r)', r=2
    # broadcat((freqs[:,None,:], freqs[None,:,:]), dim=-1) -> (ft, ft, 2*dim)
    f1 = jnp.broadcast_to(freqs[:, None, :], (ft_seq_len, ft_seq_len, dim))
    f2 = jnp.broadcast_to(freqs[None, :, :], (ft_seq_len, ft_seq_len, dim))
    fcat = jnp.concatenate([f1, f2], axis=-1)           # (ft, ft, 2*dim)

    freqs_cos = jnp.cos(fcat).reshape(-1, 2 * dim)      # (ft*ft, 2*dim)
    freqs_sin = jnp.sin(fcat).reshape(-1, 2 * dim)
    return freqs_cos, freqs_sin


def precompute_rope_coeffs(freqs_cos, freqs_sin):
    """Hoisted, cacheable kernel coefficients (like registered buffers)."""
    N, D = freqs_cos.shape
    assert freqs_sin.shape == (N, D)
    assert D % 2 == 0, "rotary feature width must be even"
    L = N * D
    cos = freqs_cos.reshape(1, L).astype(jnp.float32)
    sin = freqs_sin.reshape(1, L).astype(jnp.float32)
    even = ((jnp.arange(L, dtype=jnp.int32) % 2) == 0)[None, :]
    sin_e = jnp.where(even, -sin, 0.0)   # multiplies x[j+1] at even j
    sin_o = jnp.where(even, 0.0, sin)    # multiplies x[j-1] at odd j
    cos, sin_e, sin_o = jax.device_put((cos, sin_e, sin_o))
    return (cos, sin_e, sin_o)


# ----------------------------------------------------------------------------
# Kernel: out = x*cos + roll(x,-1)*sin_e + roll(x,+1)*sin_o
# ----------------------------------------------------------------------------
def _rope_kernel(t_ref, cos_ref, sin_e_ref, sin_o_ref, o_ref):
    x_nat = t_ref[...]                              # native dtype (bf16 stays packed
    L = x_nat.shape[-1]                             # through the XLU rolls)
    x_next = pltpu.roll(x_nat, L - 1, axis=1)       # x_next[j] = x[(j+1) % L]
    x_prev = pltpu.roll(x_nat, 1, axis=1)           # x_prev[j] = x[(j-1) % L]
    out = (x_nat.astype(jnp.float32) * cos_ref[...]
           + x_next.astype(jnp.float32) * sin_e_ref[...]
           + x_prev.astype(jnp.float32) * sin_o_ref[...])
    o_ref[...] = out.astype(o_ref.dtype)


# ----------------------------------------------------------------------------
# Generation-aware tiling
# ----------------------------------------------------------------------------
def _tpu_device_kind():
    try:
        return jax.devices()[0].device_kind.lower()
    except Exception:
        return ""


def _target_block_bytes():
    kind = _tpu_device_kind()
    # v6e (~1.4 TB/s) and v7x (3.2 TB/s): 4 MiB blocks keep per-step pipeline
    # overhead (~0.35 us) small while double-buffered in+out (~16 MiB) stays
    # inside the 32 MiB scoped-VMEM default.  v5e keeps 2 MiB (16 MiB default).
    if ("v6" in kind) or ("7" in kind):
        return 4 << 20
    return 2 << 20


def _want_even_grid_steps():
    return "7" in _tpu_device_kind()   # v7x: 2 TensorCores -> balanced step count


def _choose_rows_per_block(num_rows, row_bytes, target_block_bytes=None,
                           want_even_steps=False):
    """Sublane-aligned row block; prefers no padded tail and (v7x) even steps."""
    if target_block_bytes is None:
        target_block_bytes = _target_block_bytes()
    rows = max(1, target_block_bytes // max(1, row_bytes))
    if rows >= num_rows:
        if want_even_steps and num_rows % 16 == 0:
            return num_rows // 2        # 2 balanced steps -> both TCs busy
        return num_rows                 # full extent is always a legal block shape
    rows = min(max(8, (rows // 8) * 8), num_rows)

    def _search(require_even_steps):
        r = rows - (rows % 8)
        while r >= 8:
            if num_rows % r == 0 and (
                    not require_even_steps or (num_rows // r) % 2 == 0):
                return r
            r -= 8
        return None

    best = _search(True) if want_even_steps else None
    if best is None:
        best = _search(False)
    return best if best is not None else rows


# ----------------------------------------------------------------------------
# Forward wrapper
# ----------------------------------------------------------------------------
def vision_rope_forward(t, coeffs, *, block_bytes_override=None,
                        donate_input=False):
    """Pallas forward of VisionRotaryEmbeddingFast (patch_indices_keep=None)."""
    cos, sin_e, sin_o = coeffs
    B, H, N, D = t.shape
    L = N * D
    assert D % 2 == 0, "rotary feature width must be even"
    assert cos.shape == (1, L) and sin_e.shape == (1, L) and sin_o.shape == (1, L)

    R = B * H
    t_flat = t.reshape(R, L)                       # lane-dense last dim

    tb = _choose_rows_per_block(
        R, L * t_flat.dtype.itemsize,
        target_block_bytes=block_bytes_override,
        want_even_steps=_want_even_grid_steps())
    grid = (pl.cdiv(R, tb),)

    out = pl.pallas_call(
        _rope_kernel,
        out_shape=jax.ShapeDtypeStruct((R, L), t.dtype),
        grid=grid,
        in_specs=[
            pl.BlockSpec((tb, L), lambda i: (i, 0)),
            pl.BlockSpec((1, L), lambda i: (0, 0)),   # resident across steps
            pl.BlockSpec((1, L), lambda i: (0, 0)),
            pl.BlockSpec((1, L), lambda i: (0, 0)),
        ],
        out_specs=pl.BlockSpec((tb, L), lambda i: (i, 0)),
        compiler_params=pltpu.CompilerParams(
            dimension_semantics=("parallel",)),
        input_output_aliases=({0: 0} if donate_input else {}),
    )(t_flat, cos, sin_e, sin_o)
    return out.reshape(B, H, N, D)


# ----------------------------------------------------------------------------
# Pure-JAX reference (mirrors the PyTorch forward) for verification
# ----------------------------------------------------------------------------
def _rotate_half_ref(x):
    xr = x.reshape(*x.shape[:-1], -1, 2)
    x1, x2 = xr[..., 0], xr[..., 1]
    return jnp.stack((-x2, x1), axis=-1).reshape(x.shape)


def _forward_ref(t, freqs_cos, freqs_sin):
    return t * freqs_cos + _rotate_half_ref(t) * freqs_sin


if __name__ == "__main__":
    key = jax.random.PRNGKey(0)

    # dim=16, pt_seq_len=4 -> buffers (N, D) = (16, 32)
    dim, pt_seq_len = 16, 4
    freqs_cos, freqs_sin = build_rope_buffers(dim, pt_seq_len)
    coeffs = precompute_rope_coeffs(freqs_cos, freqs_sin)   # hoisted, reused
    N, D = freqs_cos.shape

    k1, k2, k3 = jax.random.split(key, 3)

    # Config 1: f32, single-block grid.
    B, H = 2, 4
    t1 = jax.random.normal(k1, (B, H, N, D), dtype=jnp.float32)
    out1 = jax.block_until_ready(vision_rope_forward(t1, coeffs))
    ref1 = _forward_ref(t1, freqs_cos, freqs_sin)
    assert out1.shape == ref1.shape and out1.dtype == ref1.dtype
    assert jnp.allclose(out1, ref1, atol=1e-5, rtol=1e-5), "mismatch (cfg 1)"

    # Config 2: multi-step grid with a partial tail block (forced small blocks).
    B2, H2 = 3, 7
    t2 = jax.random.normal(k2, (B2, H2, N, D), dtype=jnp.float32)
    out2 = jax.block_until_ready(
        vision_rope_forward(t2, coeffs, block_bytes_override=16 << 10))
    ref2 = _forward_ref(t2, freqs_cos, freqs_sin)
    assert jnp.allclose(out2, ref2, atol=1e-5, rtol=1e-5), "mismatch (cfg 2)"

    # Config 3: bf16 activations (rolls run on the packed bf16 tile in-kernel).
    t3 = jax.random.normal(k3, (B, H, N, D), dtype=jnp.float32)
    t3_bf16 = t3.astype(jnp.bfloat16)
    out3 = jax.block_until_ready(vision_rope_forward(t3_bf16, coeffs))
    ref3 = _forward_ref(t3_bf16.astype(jnp.float32), freqs_cos, freqs_sin)
    assert out3.dtype == jnp.bfloat16
    assert jnp.allclose(out3.astype(jnp.float32), ref3, atol=5e-2, rtol=5e-2), \
        "mismatch (cfg 3)"

    print("KERNEL_OK")
</pallas_src>

<mosaic_0001>
module attributes {stable_mosaic.version = 11 : i64} {
  func.func @_rope_kernel(%arg0: i32, %arg1: memref<8x512xf32, #tpu.memory_space<vmem>>, %arg2: memref<1x512xf32, #tpu.memory_space<vmem>>, %arg3: memref<1x512xf32, #tpu.memory_space<vmem>>, %arg4: memref<1x512xf32, #tpu.memory_space<vmem>>, %arg5: memref<8x512xf32, #tpu.memory_space<vmem>>) attributes {dimension_semantics = [#tpu.dimension_semantics<parallel>], iteration_bounds = array<i64: 1>, scalar_prefetch = 0 : i64, scratch_operands = 0 : i64, tpu.core_type = #tpu.core_type<tc>, window_params = [{transform_indices = @transform_0, window_bounds = array<i64: 8, 512>}, {pipeline_mode = #tpu.pipeline_mode<synchronous>, transform_indices = @transform_1, window_bounds = array<i64: 1, 512>}, {pipeline_mode = #tpu.pipeline_mode<synchronous>, transform_indices = @transform_2, window_bounds = array<i64: 1, 512>}, {pipeline_mode = #tpu.pipeline_mode<synchronous>, transform_indices = @transform_3, window_bounds = array<i64: 1, 512>}, {transform_indices = @transform_4, window_bounds = array<i64: 8, 512>}]} {
    %c0 = arith.constant 0 : index
    %c0_0 = arith.constant 0 : index
    %0 = vector.load %arg1[%c0, %c0_0] : memref<8x512xf32, #tpu.memory_space<vmem>>, vector<8x512xf32>
    %c511_i32 = arith.constant 511 : i32
    %1 = tpu.dynamic_rotate %0 by %c511_i32 dim 1 : vector<8x512xf32>, i32 -> vector<8x512xf32>
    %c1_i32 = arith.constant 1 : i32
    %2 = tpu.dynamic_rotate %0 by %c1_i32 dim 1 : vector<8x512xf32>, i32 -> vector<8x512xf32>
    %c0_1 = arith.constant 0 : index
    %c0_2 = arith.constant 0 : index
    %3 = vector.load %arg2[%c0_1, %c0_2] : memref<1x512xf32, #tpu.memory_space<vmem>>, vector<1x512xf32>
    %4 = vector.broadcast %3 : vector<1x512xf32> to vector<8x512xf32>
    %5 = arith.mulf %0, %4 : vector<8x512xf32>
    %c0_3 = arith.constant 0 : index
    %c0_4 = arith.constant 0 : index
    %6 = vector.load %arg3[%c0_3, %c0_4] : memref<1x512xf32, #tpu.memory_space<vmem>>, vector<1x512xf32>
    %7 = vector.broadcast %6 : vector<1x512xf32> to vector<8x512xf32>
    %8 = arith.mulf %1, %7 : vector<8x512xf32>
    %9 = arith.addf %5, %8 : vector<8x512xf32>
    %c0_5 = arith.constant 0 : index
    %c0_6 = arith.constant 0 : index
    %10 = vector.load %arg4[%c0_5, %c0_6] : memref<1x512xf32, #tpu.memory_space<vmem>>, vector<1x512xf32>
    %11 = vector.broadcast %10 : vector<1x512xf32> to vector<8x512xf32>
    %12 = arith.mulf %2, %11 : vector<8x512xf32>
    %13 = arith.addf %9, %12 : vector<8x512xf32>
    %c0_7 = arith.constant 0 : index
    %c0_8 = arith.constant 0 : index
    %14 = vector.load %arg5[%c0_7, %c0_8] : memref<8x512xf32, #tpu.memory_space<vmem>>, vector<8x512xf32>
    tpu.vector_store %arg5[%c0_7, %c0_8], %13 {strides = array<i32>} : memref<8x512xf32, #tpu.memory_space<vmem>>, vector<8x512xf32>,
    return
  }
  func.func @transform_0(%arg0: i32) -> (i32, i32) {
    %c0_i32 = arith.constant 0 : i32
    %c0_i32_0 = arith.constant 0 : i32
    return %arg0, %c0_i32 : i32, i32
  }
  func.func @transform_1(%arg0: i32) -> (i32, i32) {
    %c0_i32 = arith.constant 0 : i32
    %c0_i32_0 = arith.constant 0 : i32
    %c0_i32_1 = arith.constant 0 : i32
    return %c0_i32, %c0_i32_0 : i32, i32
  }
  func.func @transform_2(%arg0: i32) -> (i32, i32) {
    %c0_i32 = arith.constant 0 : i32
    %c0_i32_0 = arith.constant 0 : i32
    %c0_i32_1 = arith.constant 0 : i32
    return %c0_i32, %c0_i32_0 : i32, i32
  }
  func.func @transform_3(%arg0: i32) -> (i32, i32) {
    %c0_i32 = arith.constant 0 : i32
    %c0_i32_0 = arith.constant 0 : i32
    %c0_i32_1 = arith.constant 0 : i32
    return %c0_i32, %c0_i32_0 : i32, i32
  }
  func.func @transform_4(%arg0: i32) -> (i32, i32) {
    %c0_i32 = arith.constant 0 : i32
    %c0_i32_0 = arith.constant 0 : i32
    return %arg0, %c0_i32 : i32, i32
  }
}

</mosaic_0001>

<bundles_post_ra>
// kernel: tpu_custom_call.1
= control target key start
LH: loop header
LB: loop body
LE: loop exit
PB: predicated region body
PF: predicated region fallthrough
CT: control target
= control target key end

     0   :  { %9 = vsyncpa [#allocation3], 0  ;;  %s337_s0 = inlined_call_operand.hbm [shape: f32[8,512], index: 0, kind: input, shape index: {}]   ;;  %s338_s1 = inlined_call_operand.hbm [shape: f32[1,512], index: 1, kind: input, shape index: {}]   ;;  %s339_s2 = inlined_call_operand.hbm [shape: f32[1,512], index: 2, kind: input, shape index: {}]   ;;  %s340_s3 = inlined_call_operand.vmem [shape: f32[1,512], index: 3, kind: input, shape index: {}]   ;;  %s341_s4 = inlined_call_operand.hbm [shape: f32[8,512], index: 4, kind: output, shape index: {}]  }
   0x1   :  { %10 = vsyncpa [#allocation6], 0 }
   0x2   :  { %11 = vsyncpa [#allocation4], 0  ;;  %s283_s15 = smov [#allocation5]   ;;  %s284_s17 = smov [#allocation2]  }
   0x3   :  { %s28_s16 = sshll.u32 %s283_s15, 4  ;;  %s18_s18 = sshll.u32 %s284_s17, 4  ;;  %s29_s16 = int_to_ptr.vmem [resolvable:$true] %s28_s16  ;;  %s19_s18 = int_to_ptr.vmem [resolvable:$true] %s18_s18 }
   0x4   :  { %s205_s19 = scalar_lea.vmem %s29_s16, 64  ;;  %p210_p1 = scmp.lt.s32.totalorder %s29_s16, %s29_s16 }
   0x5   :  { %p206_p0 = scmp.ne.s32.totalorder %s29_s16, %s205_s19  ;;  %p211_p2 = scmp.lt.s32.totalorder %s205_s19, %s205_s19 }
   0x7   :  { %p212_p3 = por %p211_p2, %p210_p1 }
   0x9   :  { %p213_p4 = pnand %p212_p3, %p206_p0 }
   0xb   :  { %216 = shalt.err (!%p213_p4)
}
   0xc   :  { %31 = dma.hbm_to_vmem [thread:$0]  %s338_s1, 64, %s29_s16, [#allocation6]  }
   0xd   :  { %s225_s22 = scalar_lea.vmem %s19_s18, 512  ;;  %p230_p6 = scmp.lt.s32.totalorder %s19_s18, %s19_s18 }
   0xe   :  { %p226_p5 = scmp.ne.s32.totalorder %s19_s18, %s225_s22  ;;  %p231_p7 = scmp.lt.s32.totalorder %s225_s22, %s225_s22 }
  0x10   :  { %p232_p8 = por %p231_p7, %p230_p6 }
  0x12   :  { %p233_p9 = pnand %p232_p8, %p226_p5 }
  0x14   :  { %236 = shalt.err (!%p233_p9)
}
  0x15   :  { %21 = dma.hbm_to_vmem [thread:$0]  %s337_s0, 512, %s19_s18, [#allocation3]  }
  0x16   :  { %s285_s25 = smov [#allocation7]  }
  0x17   :  { %s38_s26 = sshll.u32 %s285_s25, 4  ;;  %s39_s26 = int_to_ptr.vmem [resolvable:$true] %s38_s26 }
  0x18   :  { %s245_s27 = scalar_lea.vmem %s39_s26, 64  ;;  %p250_p11 = scmp.lt.s32.totalorder %s39_s26, %s39_s26 }
  0x19   :  { %p246_p10 = scmp.ne.s32.totalorder %s39_s26, %s245_s27  ;;  %p251_p12 = scmp.lt.s32.totalorder %s245_s27, %s245_s27 }
  0x1b   :  { %p252_p13 = por %p251_p12, %p250_p11 }
  0x1d   :  { %p253_p0 = pnand %p252_p13, %p246_p10 }
  0x1f   :  { %256 = shalt.err (!%p253_p0)
}
  0x20   :  { %41 = dma.hbm_to_vmem [thread:$0]  %s339_s2, 64, %s39_s26, [#allocation6]  }
  0x21   :  { %277 = dma.done.wait [#allocation3], 512  }
  0x22   :  { %278 = vsyncadd [#allocation3], 4294966784 }
  0x23   :  { %279 = dma.done.wait [#allocation6], 128  }
  0x24   :  { %280 = vsyncadd [#allocation6], 4294967168  ;;  %v55_v0 = vld [vmem:[#allocation2 + $0x10] sm:$0xff]  ;;  %v53_v1 = vld [vmem:[#allocation2] sm:$0xff]  ;;  %s286_s0 = smov 127   ;;  %s287_s29 = smov 1   ;;  %v65_v4 = vlaneseq }
  0x25   :  { %61 = vrot.lane.b32.xlu1 %v55_v0, %s286_s0  ;;  %57 = vrot.lane.b32.xlu0 %v53_v1, %s286_s0  ;;  %v56_v2 = vld [vmem:[#allocation2 + $0x18] sm:$0xff]  ;;  %v54_v3 = vld [vmem:[#allocation2 + $0x8] sm:$0xff]  ;;  %v85_v8 = vld [vmem:[#allocation5] sm:$0xf] }
  0x26   :  { %v88_v5 = vshrl.u32 %v65_v4, 7  ;;  %v66_v7 = vand.u32 127, %v65_v4  ;;  %v111_v9 = vld [vmem:[#allocation7] sm:$0xf]  ;;  %v141_v17 = vld [vmem:[%s340_s3] sm:$0xf] }
  0x27   :  { %s288_s3 = smov [#allocation8]  }
  0x28   :  { %v93_v6 = vsub.s32 1, %v88_v5  ;;  %v97_v10 = vsub.s32 2, %v88_v5  ;;  %v89_v11 = vsub.s32 0, %v88_v5  ;;  %v101_v12 = vsub.s32 3, %v88_v5  ;;  %s181_s5 = sshll.u32 %s288_s3, 4  ;;  %s182_s5 = int_to_ptr.vmem [resolvable:$true] %s181_s5 }
  0x29   :  { %63 = vrot.lane.b32.xlu1 %v56_v2, %s286_s0  ;;  %59 = vrot.lane.b32.xlu0 %v54_v3, %s286_s0  ;;  %vm67_vm0 = vcmp.lt.s32.totalorder %v66_v7, 127  ;;  %vm80_vm1 = vcmp.lt.s32.totalorder %v66_v7, 1  ;;  %s257_s6 = scalar_lea.vmem %s182_s5, 512  ;;  %p262_p2 = scmp.lt.s32.totalorder %s182_s5, %s182_s5 }
  0x2a   :  { %v94_v15 = vrot.slane %v85_v8, %v93_v6  ;;  %v120_v16 = vrot.slane %v111_v9, %v93_v6  ;;  %v98_v18 = vrot.slane %v85_v8, %v97_v10  ;;  %v90_v19 = vrot.slane %v85_v8, %v89_v11  ;;  %p258_p1 = scmp.ne.s32.totalorder %s182_s5, %s257_s6  ;;  %p263_p3 = scmp.lt.s32.totalorder %s257_s6, %s257_s6 }
  0x2b   :  { %v102_v20 = vrot.slane %v85_v8, %v101_v12  ;;  %v124_v21 = vrot.slane %v111_v9, %v97_v10  ;;  %v128_v24 = vrot.slane %v111_v9, %v101_v12  ;;  %v116_v26 = vrot.slane %v111_v9, %v89_v11 }
  0x2c   :  { %v108_v28 = vmul.f32 %v94_v15, %v54_v3  ;;  %v150_v31 = vrot.slane %v141_v17, %v93_v6  ;;  %v109_v33 = vmul.f32 %v98_v18, %v55_v0  ;;  %v107_v34 = vmul.f32 %v90_v19, %v53_v1  ;;  %p264_p4 = por %p263_p3, %p262_p2 }
  0x2d   :  { %74 = vrot.lane.b32.xlu1 %v54_v3, %s287_s29  ;;  %72 = vrot.lane.b32.xlu0 %v53_v1, %s287_s29  ;;  %v110_v35 = vmul.f32 %v102_v20, %v56_v2  ;;  %v146_v41 = vrot.slane %v141_v17, %v89_v11  ;;  %v154_v42 = vrot.slane %v141_v17, %v97_v10 }
  0x2e   :  { %v158_v46 = vrot.slane %v141_v17, %v101_v12  ;;  %p265_p5 = pnand %p264_p4, %p258_p1 }
  0x31   :  { %78 = vrot.lane.b32.xlu1 %v56_v2, %s287_s29  ;;  %76 = vrot.lane.b32.xlu0 %v55_v0, %s287_s29 }
  0x97   :  { %v62_v13 = vpop.permute.xlu1 %61  ;;  %v58_v14 = vpop.permute.xlu0 %57 }
  0x9b   :  { %v64_v22 = vpop.permute.xlu1 %63  ;;  %v60_v23 = vpop.permute.xlu0 %59 }
  0x9c   :  { %v68_v25 = vsel %vm67_vm0, %v62_v13, %v64_v22  ;;  %v69_v27 = vsel %vm67_vm0, %v60_v23, %v62_v13  ;;  %v71_v29 = vsel %vm67_vm0, %v64_v22, %v58_v14  ;;  %v70_v32 = vsel %vm67_vm0, %v58_v14, %v60_v23 }
  0x9d   :  { %v134_v30 = vmul.f32 %v120_v16, %v69_v27  ;;  %v135_v36 = vmul.f32 %v124_v21, %v68_v25  ;;  %v136_v39 = vmul.f32 %v128_v24, %v71_v29  ;;  %v133_v43 = vmul.f32 %v116_v26, %v70_v32 }
  0x9f   :  { %v75_v37 = vpop.permute.xlu1 %74  ;;  %v73_v38 = vpop.permute.xlu0 %72  ;;  %v138_v44 = vadd.f32 %v134_v30, %v108_v28  ;;  %v139_v47 = vadd.f32 %v135_v36, %v109_v33  ;;  %v140_v51 = vadd.f32 %v136_v39, %v110_v35  ;;  %v137_v55 = vadd.f32 %v133_v43, %v107_v34 }
  0xa0   :  { %v83_v40 = vsel %vm80_vm1, %v73_v38, %v75_v37 }
  0xa1   :  { %v164_v45 = vmul.f32 %v150_v31, %v83_v40 }
  0xa3   :  { %v168_v48 = vadd.f32 %v164_v45, %v138_v44  ;;  %v79_v49 = vpop.permute.xlu1 %78  ;;  %v77_v50 = vpop.permute.xlu0 %76 }
  0xa4   :  { %v84_v52 = vsel %vm80_vm1, %v79_v49, %v73_v38  ;;  %v81_v53 = vsel %vm80_vm1, %v77_v50, %v79_v49  ;;  %v82_v54 = vsel %vm80_vm1, %v75_v37, %v77_v50 }
  0xa5   :  { %172 = vst [vmem:[#allocation8 + $0x8] sm:$0xff] %v168_v48  ;;  %v163_v56 = vmul.f32 %v146_v41, %v84_v52  ;;  %v165_v57 = vmul.f32 %v154_v42, %v82_v54  ;;  %v166_v58 = vmul.f32 %v158_v46, %v81_v53 }
  0xa7   :  { %v167_v59 = vadd.f32 %v163_v56, %v137_v55  ;;  %v169_v60 = vadd.f32 %v165_v57, %v139_v47  ;;  %v170_v61 = vadd.f32 %v166_v58, %v140_v51 }
  0xa9   :  { %171 = vst [vmem:[#allocation8] sm:$0xff] %v167_v59  ;;  %173 = vst [vmem:[#allocation8 + $0x10] sm:$0xff] %v169_v60 }
  0xaa   :  { %174 = vst [vmem:[#allocation8 + $0x18] sm:$0xff] %v170_v61 }
  0xab   :  { %268 = shalt.err (!%p265_p5)
}
  0xac   :  { %184 = dma.vmem_to_hbm [thread:$0]  %s182_s5, 512, %s341_s4, [#allocation4]  }
  0xad   :  { %281 = dma.done.wait [#allocation4], 512  }
  0xae   :  { %282 = vsyncadd [#allocation4], 4294966784 }
  0xaf   :  { %188 = vsyncpa [#allocation3], 1 }
  0xb0   :  { %189 = vsyncpa [#allocation6], 1 }
  0xb1   :  { %190 = vsyncpa [#allocation4], 1 }

</bundles_post_ra>
